<compile_context>
chip_gen: v7x
topology: tpu7x:2x2x1
jax: 0.10.0
libtpu: 0.0.40
codegen_flags: <defaults>
</compile_context>

<pallas_src>
import functools

import jax
import jax.numpy as jnp
from jax import lax
from jax.experimental import pallas as pl
from jax.experimental.pallas import tpu as pltpu


def _character_lstm_kernel(
    x_ref,       # (S*Bp, D)   time-major inputs, batch padded to Bp sublanes
    mask_ref,    # (S*Bp, 1)   1.0 where t < length[b], else 0.0
    wih_ref,     # (D, 4H)     input->gates weights (transposed)
    whh_ref,     # (H, 4H)     hidden->gates weights (transposed)
    bg_ref,      # (1, 4H)     combined gate bias (b_ih + b_hh)
    wlin_ref,    # (H, Op)     linear weights (transposed), padded cols = 0
    blin_ref,    # (1, Op)     linear bias, padded entries = -1e30
    out_ref,     # (S*Bp, Op)  softmax probabilities (lane-dense slab)
    gx_ref,      # VMEM scratch (S*Bp, 4H) f32: hoisted input projection
    hall_ref,    # VMEM scratch (S*Bp, H)  f32: per-timestep hidden states
    *,
    seq_len: int,
    bp: int,
):
    H = whh_ref.shape[0]

    # (1) Hoisted input projection: one big sublane/lane-dense matmul for all
    #     timesteps (instead of S tiny matmuls inside the recurrence).
    gx_ref[...] = (
        jnp.dot(x_ref[...], wih_ref[...], preferred_element_type=jnp.float32)
        + bg_ref[...]
    )

    whh = whh_ref[...]   # hoist the invariant weight load out of the loop

    # (2) Serial recurrence: only the recurrent (Bp,H)x(H,4H) matmul remains in
    #     the time loop; h/c are loop carries, per-step hidden goes to VMEM.
    def step(t, carry):
        h, c = carry
        row = pl.multiple_of(t * bp, bp)
        gates = gx_ref[pl.ds(row, bp), :] + jnp.dot(
            h, whh, preferred_element_type=jnp.float32)          # (Bp, 4H)
        i_g = jax.nn.sigmoid(gates[:, 0 * H:1 * H])
        f_g = jax.nn.sigmoid(gates[:, 1 * H:2 * H])
        g_g = jnp.tanh(gates[:, 2 * H:3 * H])
        o_g = jax.nn.sigmoid(gates[:, 3 * H:4 * H])
        c_new = f_g * c + i_g * g_g
        h_new = o_g * jnp.tanh(c_new)
        hall_ref[pl.ds(row, bp), :] = h_new
        return h_new, c_new

    h0 = jnp.zeros((bp, H), jnp.float32)    # init_hidden(): zero (h, c)
    c0 = jnp.zeros((bp, H), jnp.float32)
    lax.fori_loop(0, seq_len, step, (h0, c0), unroll=True)

    # (3) pack/pad semantics: zero LSTM output at t >= length[b], then one
    #     lane-dense linear + softmax over all timesteps at once.
    h_all = hall_ref[...] * mask_ref[...]                          # (S*Bp, H)
    logits = (
        jnp.dot(h_all, wlin_ref[...], preferred_element_type=jnp.float32)
        + blin_ref[...]
    )                                                              # (S*Bp, Op)
    m = jnp.max(logits, axis=-1, keepdims=True)
    e = jnp.exp(logits - m)                  # padded lanes: exp(-1e30 - m) == 0
    denom = jnp.sum(e, axis=-1, keepdims=True)
    r = pl.reciprocal(denom, approx=True)    # EUP slot (nearly free)
    r = r * (2.0 - denom * r)                # one Newton step -> f32-accurate
    out_ref[...] = (e * r).astype(out_ref.dtype)


def character_lstm_forward(inputs, input_lengths, params):
    """inputs: (B, S, D) f32, input_lengths: (B,) int32 -> (B, S, O) f32."""
    w_ih, w_hh, b_ih, b_hh, w_lin, b_lin = params
    B, S, D = inputs.shape
    H = w_hh.shape[1]
    O = w_lin.shape[0]

    Bp = ((B + 7) // 8) * 8          # pad batch to full sublanes
    Op = ((O + 127) // 128) * 128    # pad output dim to full lanes (dense stores)

    # Time-major, batch-padded input slab (S*Bp, D); padded rows get length 0.
    x_tm = jnp.transpose(inputs.astype(jnp.float32), (1, 0, 2))        # (S, B, D)
    x_tm = jnp.pad(x_tm, ((0, 0), (0, Bp - B), (0, 0))).reshape(S * Bp, D)

    lens = jnp.pad(input_lengths.astype(jnp.int32), (0, Bp - B))       # (Bp,)
    mask = (jnp.arange(S, dtype=jnp.int32)[:, None] < lens[None, :])   # (S, Bp)
    mask = mask.astype(jnp.float32).reshape(S * Bp, 1)

    wih_t = jnp.transpose(w_ih).astype(jnp.float32)                    # (D, 4H)
    whh_t = jnp.transpose(w_hh).astype(jnp.float32)                    # (H, 4H)
    b_g = (b_ih + b_hh).reshape(1, 4 * H).astype(jnp.float32)          # (1, 4H)
    wlin_t = jnp.pad(jnp.transpose(w_lin).astype(jnp.float32),
                     ((0, 0), (0, Op - O)))                            # (H, Op)
    # Padded output lanes get a huge negative bias so they vanish in softmax.
    blin = jnp.pad(b_lin.astype(jnp.float32), (0, Op - O),
                   constant_values=-1e30).reshape(1, Op)               # (1, Op)

    grid_spec = pltpu.PrefetchScalarGridSpec(
        num_scalar_prefetch=0,
        grid=(1,),                                  # whole sequence in one step
        in_specs=[
            pl.BlockSpec((S * Bp, D), lambda i: (0, 0)),
            pl.BlockSpec((S * Bp, 1), lambda i: (0, 0)),
            pl.BlockSpec((D, 4 * H), lambda i: (0, 0)),
            pl.BlockSpec((H, 4 * H), lambda i: (0, 0)),
            pl.BlockSpec((1, 4 * H), lambda i: (0, 0)),
            pl.BlockSpec((H, Op), lambda i: (0, 0)),
            pl.BlockSpec((1, Op), lambda i: (0, 0)),
        ],
        out_specs=pl.BlockSpec((S * Bp, Op), lambda i: (0, 0)),
        scratch_shapes=[
            pltpu.VMEM((S * Bp, 4 * H), jnp.float32),   # hoisted input gates
            pltpu.VMEM((S * Bp, H), jnp.float32),       # all hidden states
        ],
    )

    out2d = pl.pallas_call(
        functools.partial(_character_lstm_kernel, seq_len=S, bp=Bp),
        out_shape=jax.ShapeDtypeStruct((S * Bp, Op), jnp.float32),
        grid_spec=grid_spec,
        compiler_params=pltpu.CompilerParams(
            dimension_semantics=("arbitrary",),
        ),
    )(x_tm, mask, wih_t, whh_t, b_g, wlin_t, blin)

    out = out2d.reshape(S, Bp, Op)[:, :B, :O]                          # (S, B, O)
    return jnp.transpose(out, (1, 0, 2))                               # (B, S, O)


def reference_forward(inputs, input_lengths, params):
    """Pure-JAX reference with identical semantics (for validation)."""
    w_ih, w_hh, b_ih, b_hh, w_lin, b_lin = params
    B, S, D = inputs.shape
    H = w_hh.shape[1]

    def cell(carry, x_t):
        h, c = carry
        gates = x_t @ w_ih.T + h @ w_hh.T + b_ih + b_hh
        i, f, g, o = jnp.split(gates, 4, axis=-1)
        i, f, g, o = jax.nn.sigmoid(i), jax.nn.sigmoid(f), jnp.tanh(g), jax.nn.sigmoid(o)
        c = f * c + i * g
        h = o * jnp.tanh(c)
        return (h, c), h

    h0 = jnp.zeros((B, H), jnp.float32)
    c0 = jnp.zeros((B, H), jnp.float32)
    _, hs = lax.scan(cell, (h0, c0), jnp.transpose(inputs, (1, 0, 2)))
    hs = jnp.transpose(hs, (1, 0, 2))                                  # (B, S, H)
    mask = (jnp.arange(S)[None, :] < input_lengths[:, None])[:, :, None]
    hs = jnp.where(mask, hs, 0.0)
    logits = hs @ w_lin.T + b_lin
    return jax.nn.softmax(logits, axis=-1)


def init_params(key, input_dim, hidden_dim, output_dim):
    """Deterministic PyTorch-style uniform(-1/sqrt(H), 1/sqrt(H)) init."""
    ks = jax.random.split(key, 6)
    k = 1.0 / jnp.sqrt(hidden_dim)
    w_ih = jax.random.uniform(ks[0], (4 * hidden_dim, input_dim), jnp.float32, -k, k)
    w_hh = jax.random.uniform(ks[1], (4 * hidden_dim, hidden_dim), jnp.float32, -k, k)
    b_ih = jax.random.uniform(ks[2], (4 * hidden_dim,), jnp.float32, -k, k)
    b_hh = jax.random.uniform(ks[3], (4 * hidden_dim,), jnp.float32, -k, k)
    w_lin = jax.random.uniform(ks[4], (output_dim, hidden_dim), jnp.float32, -k, k)
    b_lin = jax.random.uniform(ks[5], (output_dim,), jnp.float32, -k, k)
    return (w_ih, w_hh, b_ih, b_hh, w_lin, b_lin)


if __name__ == "__main__":
    batch = 2
    seq_len = 8
    input_dim = 8
    hidden_dim = 32
    output_dim = 16

    key = jax.random.PRNGKey(0)
    k_x, k_p = jax.random.split(key)

    inputs = jax.random.normal(k_x, (batch, seq_len, input_dim), jnp.float32)
    input_lengths = jnp.array([5, 8], dtype=jnp.int32)   # padded positions -> softmax(bias)
    params = init_params(k_p, input_dim, hidden_dim, output_dim)

    fwd = jax.jit(character_lstm_forward)   # fuses the pad/transpose plumbing
    out = fwd(inputs, input_lengths, params)
    out = jax.block_until_ready(out)

    ref = reference_forward(inputs, input_lengths, params)
    assert out.shape == (batch, seq_len, output_dim)
    assert jnp.allclose(out, ref, atol=1e-5, rtol=1e-5), (
        f"max abs err {jnp.max(jnp.abs(out - ref))}"
    )
    print("KERNEL_OK")
</pallas_src>

<mosaic_0001>
module attributes {stable_mosaic.version = 11 : i64} {
  func.func @_character_lstm_kernel(%arg0: i32, %arg1: memref<64x8xf32, #tpu.memory_space<vmem>>, %arg2: memref<64x1xf32, #tpu.memory_space<vmem>>, %arg3: memref<8x128xf32, #tpu.memory_space<vmem>>, %arg4: memref<32x128xf32, #tpu.memory_space<vmem>>, %arg5: memref<1x128xf32, #tpu.memory_space<vmem>>, %arg6: memref<32x128xf32, #tpu.memory_space<vmem>>, %arg7: memref<1x128xf32, #tpu.memory_space<vmem>>, %arg8: memref<64x128xf32, #tpu.memory_space<vmem>>, %arg9: memref<64x128xf32, #tpu.memory_space<vmem>>, %arg10: memref<64x32xf32, #tpu.memory_space<vmem>>) attributes {dimension_semantics = [#tpu.dimension_semantics<arbitrary>], iteration_bounds = array<i64: 1>, scalar_prefetch = 0 : i64, scratch_operands = 2 : i64, tpu.core_type = #tpu.core_type<tc>, window_params = [{pipeline_mode = #tpu.pipeline_mode<synchronous>, transform_indices = @transform_0, window_bounds = array<i64: 64, 8>}, {pipeline_mode = #tpu.pipeline_mode<synchronous>, transform_indices = @transform_1, window_bounds = array<i64: 64, 1>}, {pipeline_mode = #tpu.pipeline_mode<synchronous>, transform_indices = @transform_2, window_bounds = array<i64: 8, 128>}, {pipeline_mode = #tpu.pipeline_mode<synchronous>, transform_indices = @transform_3, window_bounds = array<i64: 32, 128>}, {pipeline_mode = #tpu.pipeline_mode<synchronous>, transform_indices = @transform_4, window_bounds = array<i64: 1, 128>}, {pipeline_mode = #tpu.pipeline_mode<synchronous>, transform_indices = @transform_5, window_bounds = array<i64: 32, 128>}, {pipeline_mode = #tpu.pipeline_mode<synchronous>, transform_indices = @transform_6, window_bounds = array<i64: 1, 128>}, {pipeline_mode = #tpu.pipeline_mode<synchronous>, transform_indices = @transform_7, window_bounds = array<i64: 64, 128>}]} {
    %c0 = arith.constant 0 : index
    %c0_0 = arith.constant 0 : index
    %0 = vector.load %arg1[%c0, %c0_0] : memref<64x8xf32, #tpu.memory_space<vmem>>, vector<64x8xf32>
    %c0_1 = arith.constant 0 : index
    %c0_2 = arith.constant 0 : index
    %1 = vector.load %arg3[%c0_1, %c0_2] : memref<8x128xf32, #tpu.memory_space<vmem>>, vector<8x128xf32>
    %cst = arith.constant dense<0.000000e+00> : vector<64x128xf32>
    %2 = tpu.matmul %0, %1, %cst {dimension_numbers = #tpu.dot_dimension_numbers<[1], [0], [0], [1], [0, 0, 1, 1], [], []>} : vector<64x8xf32>, vector<8x128xf32>, vector<64x128xf32> -> vector<64x128xf32>
    %c0_3 = arith.constant 0 : index
    %c0_4 = arith.constant 0 : index
    %3 = vector.load %arg5[%c0_3, %c0_4] : memref<1x128xf32, #tpu.memory_space<vmem>>, vector<1x128xf32>
    %4 = vector.broadcast %3 : vector<1x128xf32> to vector<64x128xf32>
    %5 = arith.addf %2, %4 : vector<64x128xf32>
    %c0_5 = arith.constant 0 : index
    %c0_6 = arith.constant 0 : index
    %6 = vector.load %arg9[%c0_5, %c0_6] : memref<64x128xf32, #tpu.memory_space<vmem>>, vector<64x128xf32>
    tpu.vector_store %arg9[%c0_5, %c0_6], %5 {strides = array<i32>} : memref<64x128xf32, #tpu.memory_space<vmem>>, vector<64x128xf32>,
    %c0_7 = arith.constant 0 : index
    %c0_8 = arith.constant 0 : index
    %7 = vector.load %arg4[%c0_7, %c0_8] : memref<32x128xf32, #tpu.memory_space<vmem>>, vector<32x128xf32>
    %cst_9 = arith.constant 0.000000e+00 : f32
    %8 = vector.broadcast %cst_9 : f32 to vector<8x32xf32>
    %cst_10 = arith.constant 0.000000e+00 : f32
    %9 = vector.broadcast %cst_10 : f32 to vector<8x32xf32>
    %c0_i32 = arith.constant 0 : i32
    %c8_i32 = arith.constant 8 : i32
    %10 = arith.muli %c0_i32, %c8_i32 : i32
    %11 = tpu.assume_multiple %10, 8 : i32
    %12 = arith.index_cast %11 : i32 to index
    %c0_11 = arith.constant 0 : index
    %13 = vector.load %arg9[%12, %c0_11] : memref<64x128xf32, #tpu.memory_space<vmem>>, vector<8x128xf32>
    %cst_12 = arith.constant dense<0.000000e+00> : vector<8x128xf32>
    %14 = tpu.matmul %8, %7, %cst_12 {dimension_numbers = #tpu.dot_dimension_numbers<[1], [0], [0], [1], [0, 0, 1, 1], [], []>} : vector<8x32xf32>, vector<32x128xf32>, vector<8x128xf32> -> vector<8x128xf32>
    %15 = arith.addf %13, %14 : vector<8x128xf32>
    %16 = vector.extract_strided_slice %15 {offsets = [0, 0], sizes = [8, 32], strides = [1, 1]} : vector<8x128xf32> to vector<8x32xf32>
    %17 = arith.negf %16 : vector<8x32xf32>
    %18 = math.exp %17 : vector<8x32xf32>
    %cst_13 = arith.constant 1.000000e+00 : f32
    %19 = vector.broadcast %cst_13 : f32 to vector<8x32xf32>
    %20 = arith.addf %19, %18 : vector<8x32xf32>
    %21 = arith.divf %19, %20 : vector<8x32xf32>
    %22 = vector.extract_strided_slice %15 {offsets = [0, 32], sizes = [8, 32], strides = [1, 1]} : vector<8x128xf32> to vector<8x32xf32>
    %23 = arith.negf %22 : vector<8x32xf32>
    %24 = math.exp %23 : vector<8x32xf32>
    %cst_14 = arith.constant 1.000000e+00 : f32
    %25 = vector.broadcast %cst_14 : f32 to vector<8x32xf32>
    %26 = arith.addf %25, %24 : vector<8x32xf32>
    %27 = arith.divf %25, %26 : vector<8x32xf32>
    %28 = vector.extract_strided_slice %15 {offsets = [0, 64], sizes = [8, 32], strides = [1, 1]} : vector<8x128xf32> to vector<8x32xf32>
    %29 = math.tanh %28 : vector<8x32xf32>
    %30 = vector.extract_strided_slice %15 {offsets = [0, 96], sizes = [8, 32], strides = [1, 1]} : vector<8x128xf32> to vector<8x32xf32>
    %31 = arith.negf %30 : vector<8x32xf32>
    %32 = math.exp %31 : vector<8x32xf32>
    %cst_15 = arith.constant 1.000000e+00 : f32
    %33 = vector.broadcast %cst_15 : f32 to vector<8x32xf32>
    %34 = arith.addf %33, %32 : vector<8x32xf32>
    %35 = arith.divf %33, %34 : vector<8x32xf32>
    %36 = arith.mulf %27, %9 : vector<8x32xf32>
    %37 = arith.mulf %21, %29 : vector<8x32xf32>
    %38 = arith.addf %36, %37 : vector<8x32xf32>
    %39 = math.tanh %38 : vector<8x32xf32>
    %40 = arith.mulf %35, %39 : vector<8x32xf32>
    %41 = arith.index_cast %11 : i32 to index
    %c0_16 = arith.constant 0 : index
    %42 = vector.load %arg10[%41, %c0_16] : memref<64x32xf32, #tpu.memory_space<vmem>>, vector<8x32xf32>
    tpu.vector_store %arg10[%41, %c0_16], %40 {strides = array<i32>} : memref<64x32xf32, #tpu.memory_space<vmem>>, vector<8x32xf32>,
    %c1_i32 = arith.constant 1 : i32
    %c8_i32_17 = arith.constant 8 : i32
    %43 = arith.muli %c1_i32, %c8_i32_17 : i32
    %44 = tpu.assume_multiple %43, 8 : i32
    %45 = arith.index_cast %44 : i32 to index
    %c0_18 = arith.constant 0 : index
    %46 = vector.load %arg9[%45, %c0_18] : memref<64x128xf32, #tpu.memory_space<vmem>>, vector<8x128xf32>
    %cst_19 = arith.constant dense<0.000000e+00> : vector<8x128xf32>
    %47 = tpu.matmul %40, %7, %cst_19 {dimension_numbers = #tpu.dot_dimension_numbers<[1], [0], [0], [1], [0, 0, 1, 1], [], []>} : vector<8x32xf32>, vector<32x128xf32>, vector<8x128xf32> -> vector<8x128xf32>
    %48 = arith.addf %46, %47 : vector<8x128xf32>
    %49 = vector.extract_strided_slice %48 {offsets = [0, 0], sizes = [8, 32], strides = [1, 1]} : vector<8x128xf32> to vector<8x32xf32>
    %50 = arith.negf %49 : vector<8x32xf32>
    %51 = math.exp %50 : vector<8x32xf32>
    %cst_20 = arith.constant 1.000000e+00 : f32
    %52 = vector.broadcast %cst_20 : f32 to vector<8x32xf32>
    %53 = arith.addf %52, %51 : vector<8x32xf32>
    %54 = arith.divf %52, %53 : vector<8x32xf32>
    %55 = vector.extract_strided_slice %48 {offsets = [0, 32], sizes = [8, 32], strides = [1, 1]} : vector<8x128xf32> to vector<8x32xf32>
    %56 = arith.negf %55 : vector<8x32xf32>
    %57 = math.exp %56 : vector<8x32xf32>
    %cst_21 = arith.constant 1.000000e+00 : f32
    %58 = vector.broadcast %cst_21 : f32 to vector<8x32xf32>
    %59 = arith.addf %58, %57 : vector<8x32xf32>
    %60 = arith.divf %58, %59 : vector<8x32xf32>
    %61 = vector.extract_strided_slice %48 {offsets = [0, 64], sizes = [8, 32], strides = [1, 1]} : vector<8x128xf32> to vector<8x32xf32>
    %62 = math.tanh %61 : vector<8x32xf32>
    %63 = vector.extract_strided_slice %48 {offsets = [0, 96], sizes = [8, 32], strides = [1, 1]} : vector<8x128xf32> to vector<8x32xf32>
    %64 = arith.negf %63 : vector<8x32xf32>
    %65 = math.exp %64 : vector<8x32xf32>
    %cst_22 = arith.constant 1.000000e+00 : f32
    %66 = vector.broadcast %cst_22 : f32 to vector<8x32xf32>
    %67 = arith.addf %66, %65 : vector<8x32xf32>
    %68 = arith.divf %66, %67 : vector<8x32xf32>
    %69 = arith.mulf %60, %38 : vector<8x32xf32>
    %70 = arith.mulf %54, %62 : vector<8x32xf32>
    %71 = arith.addf %69, %70 : vector<8x32xf32>
    %72 = math.tanh %71 : vector<8x32xf32>
    %73 = arith.mulf %68, %72 : vector<8x32xf32>
    %74 = arith.index_cast %44 : i32 to index
    %c0_23 = arith.constant 0 : index
    %75 = vector.load %arg10[%74, %c0_23] : memref<64x32xf32, #tpu.memory_space<vmem>>, vector<8x32xf32>
    tpu.vector_store %arg10[%74, %c0_23], %73 {strides = array<i32>} : memref<64x32xf32, #tpu.memory_space<vmem>>, vector<8x32xf32>,
    %c2_i32 = arith.constant 2 : i32
    %c8_i32_24 = arith.constant 8 : i32
    %76 = arith.muli %c2_i32, %c8_i32_24 : i32
    %77 = tpu.assume_multiple %76, 8 : i32
    %78 = arith.index_cast %77 : i32 to index
    %c0_25 = arith.constant 0 : index
    %79 = vector.load %arg9[%78, %c0_25] : memref<64x128xf32, #tpu.memory_space<vmem>>, vector<8x128xf32>
    %cst_26 = arith.constant dense<0.000000e+00> : vector<8x128xf32>
    %80 = tpu.matmul %73, %7, %cst_26 {dimension_numbers = #tpu.dot_dimension_numbers<[1], [0], [0], [1], [0, 0, 1, 1], [], []>} : vector<8x32xf32>, vector<32x128xf32>, vector<8x128xf32> -> vector<8x128xf32>
    %81 = arith.addf %79, %80 : vector<8x128xf32>
    %82 = vector.extract_strided_slice %81 {offsets = [0, 0], sizes = [8, 32], strides = [1, 1]} : vector<8x128xf32> to vector<8x32xf32>
    %83 = arith.negf %82 : vector<8x32xf32>
    %84 = math.exp %83 : vector<8x32xf32>
    %cst_27 = arith.constant 1.000000e+00 : f32
    %85 = vector.broadcast %cst_27 : f32 to vector<8x32xf32>
    %86 = arith.addf %85, %84 : vector<8x32xf32>
    %87 = arith.divf %85, %86 : vector<8x32xf32>
    %88 = vector.extract_strided_slice %81 {offsets = [0, 32], sizes = [8, 32], strides = [1, 1]} : vector<8x128xf32> to vector<8x32xf32>
    %89 = arith.negf %88 : vector<8x32xf32>
    %90 = math.exp %89 : vector<8x32xf32>
    %cst_28 = arith.constant 1.000000e+00 : f32
    %91 = vector.broadcast %cst_28 : f32 to vector<8x32xf32>
    %92 = arith.addf %91, %90 : vector<8x32xf32>
    %93 = arith.divf %91, %92 : vector<8x32xf32>
    %94 = vector.extract_strided_slice %81 {offsets = [0, 64], sizes = [8, 32], strides = [1, 1]} : vector<8x128xf32> to vector<8x32xf32>
    %95 = math.tanh %94 : vector<8x32xf32>
    %96 = vector.extract_strided_slice %81 {offsets = [0, 96], sizes = [8, 32], strides = [1, 1]} : vector<8x128xf32> to vector<8x32xf32>
    %97 = arith.negf %96 : vector<8x32xf32>
    %98 = math.exp %97 : vector<8x32xf32>
    %cst_29 = arith.constant 1.000000e+00 : f32
    %99 = vector.broadcast %cst_29 : f32 to vector<8x32xf32>
    %100 = arith.addf %99, %98 : vector<8x32xf32>
    %101 = arith.divf %99, %100 : vector<8x32xf32>
    %102 = arith.mulf %93, %71 : vector<8x32xf32>
    %103 = arith.mulf %87, %95 : vector<8x32xf32>
    %104 = arith.addf %102, %103 : vector<8x32xf32>
    %105 = math.tanh %104 : vector<8x32xf32>
    %106 = arith.mulf %101, %105 : vector<8x32xf32>
    %107 = arith.index_cast %77 : i32 to index
    %c0_30 = arith.constant 0 : index
    %108 = vector.load %arg10[%107, %c0_30] : memref<64x32xf32, #tpu.memory_space<vmem>>, vector<8x32xf32>
    tpu.vector_store %arg10[%107, %c0_30], %106 {strides = array<i32>} : memref<64x32xf32, #tpu.memory_space<vmem>>, vector<8x32xf32>,
    %c3_i32 = arith.constant 3 : i32
    %c8_i32_31 = arith.constant 8 : i32
    %109 = arith.muli %c3_i32, %c8_i32_31 : i32
    %110 = tpu.assume_multiple %109, 8 : i32
    %111 = arith.index_cast %110 : i32 to index
    %c0_32 = arith.constant 0 : index
    %112 = vector.load %arg9[%111, %c0_32] : memref<64x128xf32, #tpu.memory_space<vmem>>, vector<8x128xf32>
    %cst_33 = arith.constant dense<0.000000e+00> : vector<8x128xf32>
    %113 = tpu.matmul %106, %7, %cst_33 {dimension_numbers = #tpu.dot_dimension_numbers<[1], [0], [0], [1], [0, 0, 1, 1], [], []>} : vector<8x32xf32>, vector<32x128xf32>, vector<8x128xf32> -> vector<8x128xf32>
    %114 = arith.addf %112, %113 : vector<8x128xf32>
    %115 = vector.extract_strided_slice %114 {offsets = [0, 0], sizes = [8, 32], strides = [1, 1]} : vector<8x128xf32> to vector<8x32xf32>
    %116 = arith.negf %115 : vector<8x32xf32>
    %117 = math.exp %116 : vector<8x32xf32>
    %cst_34 = arith.constant 1.000000e+00 : f32
    %118 = vector.broadcast %cst_34 : f32 to vector<8x32xf32>
    %119 = arith.addf %118, %117 : vector<8x32xf32>
    %120 = arith.divf %118, %119 : vector<8x32xf32>
    %121 = vector.extract_strided_slice %114 {offsets = [0, 32], sizes = [8, 32], strides = [1, 1]} : vector<8x128xf32> to vector<8x32xf32>
    %122 = arith.negf %121 : vector<8x32xf32>
    %123 = math.exp %122 : vector<8x32xf32>
    %cst_35 = arith.constant 1.000000e+00 : f32
    %124 = vector.broadcast %cst_35 : f32 to vector<8x32xf32>
    %125 = arith.addf %124, %123 : vector<8x32xf32>
    %126 = arith.divf %124, %125 : vector<8x32xf32>
    %127 = vector.extract_strided_slice %114 {offsets = [0, 64], sizes = [8, 32], strides = [1, 1]} : vector<8x128xf32> to vector<8x32xf32>
    %128 = math.tanh %127 : vector<8x32xf32>
    %129 = vector.extract_strided_slice %114 {offsets = [0, 96], sizes = [8, 32], strides = [1, 1]} : vector<8x128xf32> to vector<8x32xf32>
    %130 = arith.negf %129 : vector<8x32xf32>
    %131 = math.exp %130 : vector<8x32xf32>
    %cst_36 = arith.constant 1.000000e+00 : f32
    %132 = vector.broadcast %cst_36 : f32 to vector<8x32xf32>
    %133 = arith.addf %132, %131 : vector<8x32xf32>
    %134 = arith.divf %132, %133 : vector<8x32xf32>
    %135 = arith.mulf %126, %104 : vector<8x32xf32>
    %136 = arith.mulf %120, %128 : vector<8x32xf32>
    %137 = arith.addf %135, %136 : vector<8x32xf32>
    %138 = math.tanh %137 : vector<8x32xf32>
    %139 = arith.mulf %134, %138 : vector<8x32xf32>
    %140 = arith.index_cast %110 : i32 to index
    %c0_37 = arith.constant 0 : index
    %141 = vector.load %arg10[%140, %c0_37] : memref<64x32xf32, #tpu.memory_space<vmem>>, vector<8x32xf32>
    tpu.vector_store %arg10[%140, %c0_37], %139 {strides = array<i32>} : memref<64x32xf32, #tpu.memory_space<vmem>>, vector<8x32xf32>,
    %c4_i32 = arith.constant 4 : i32
    %c8_i32_38 = arith.constant 8 : i32
    %142 = arith.muli %c4_i32, %c8_i32_38 : i32
    %143 = tpu.assume_multiple %142, 8 : i32
    %144 = arith.index_cast %143 : i32 to index
    %c0_39 = arith.constant 0 : index
    %145 = vector.load %arg9[%144, %c0_39] : memref<64x128xf32, #tpu.memory_space<vmem>>, vector<8x128xf32>
    %cst_40 = arith.constant dense<0.000000e+00> : vector<8x128xf32>
    %146 = tpu.matmul %139, %7, %cst_40 {dimension_numbers = #tpu.dot_dimension_numbers<[1], [0], [0], [1], [0, 0, 1, 1], [], []>} : vector<8x32xf32>, vector<32x128xf32>, vector<8x128xf32> -> vector<8x128xf32>
    %147 = arith.addf %145, %146 : vector<8x128xf32>
    %148 = vector.extract_strided_slice %147 {offsets = [0, 0], sizes = [8, 32], strides = [1, 1]} : vector<8x128xf32> to vector<8x32xf32>
    %149 = arith.negf %148 : vector<8x32xf32>
    %150 = math.exp %149 : vector<8x32xf32>
    %cst_41 = arith.constant 1.000000e+00 : f32
    %151 = vector.broadcast %cst_41 : f32 to vector<8x32xf32>
    %152 = arith.addf %151, %150 : vector<8x32xf32>
    %153 = arith.divf %151, %152 : vector<8x32xf32>
    %154 = vector.extract_strided_slice %147 {offsets = [0, 32], sizes = [8, 32], strides = [1, 1]} : vector<8x128xf32> to vector<8x32xf32>
    %155 = arith.negf %154 : vector<8x32xf32>
    %156 = math.exp %155 : vector<8x32xf32>
    %cst_42 = arith.constant 1.000000e+00 : f32
    %157 = vector.broadcast %cst_42 : f32 to vector<8x32xf32>
    %158 = arith.addf %157, %156 : vector<8x32xf32>
    %159 = arith.divf %157, %158 : vector<8x32xf32>
    %160 = vector.extract_strided_slice %147 {offsets = [0, 64], sizes = [8, 32], strides = [1, 1]} : vector<8x128xf32> to vector<8x32xf32>
    %161 = math.tanh %160 : vector<8x32xf32>
    %162 = vector.extract_strided_slice %147 {offsets = [0, 96], sizes = [8, 32], strides = [1, 1]} : vector<8x128xf32> to vector<8x32xf32>
    %163 = arith.negf %162 : vector<8x32xf32>
    %164 = math.exp %163 : vector<8x32xf32>
    %cst_43 = arith.constant 1.000000e+00 : f32
    %165 = vector.broadcast %cst_43 : f32 to vector<8x32xf32>
    %166 = arith.addf %165, %164 : vector<8x32xf32>
    %167 = arith.divf %165, %166 : vector<8x32xf32>
    %168 = arith.mulf %159, %137 : vector<8x32xf32>
    %169 = arith.mulf %153, %161 : vector<8x32xf32>
    %170 = arith.addf %168, %169 : vector<8x32xf32>
    %171 = math.tanh %170 : vector<8x32xf32>
    %172 = arith.mulf %167, %171 : vector<8x32xf32>
    %173 = arith.index_cast %143 : i32 to index
    %c0_44 = arith.constant 0 : index
    %174 = vector.load %arg10[%173, %c0_44] : memref<64x32xf32, #tpu.memory_space<vmem>>, vector<8x32xf32>
    tpu.vector_store %arg10[%173, %c0_44], %172 {strides = array<i32>} : memref<64x32xf32, #tpu.memory_space<vmem>>, vector<8x32xf32>,
    %c5_i32 = arith.constant 5 : i32
    %c8_i32_45 = arith.constant 8 : i32
    %175 = arith.muli %c5_i32, %c8_i32_45 : i32
    %176 = tpu.assume_multiple %175, 8 : i32
    %177 = arith.index_cast %176 : i32 to index
    %c0_46 = arith.constant 0 : index
    %178 = vector.load %arg9[%177, %c0_46] : memref<64x128xf32, #tpu.memory_space<vmem>>, vector<8x128xf32>
    %cst_47 = arith.constant dense<0.000000e+00> : vector<8x128xf32>
    %179 = tpu.matmul %172, %7, %cst_47 {dimension_numbers = #tpu.dot_dimension_numbers<[1], [0], [0], [1], [0, 0, 1, 1], [], []>} : vector<8x32xf32>, vector<32x128xf32>, vector<8x128xf32> -> vector<8x128xf32>
    %180 = arith.addf %178, %179 : vector<8x128xf32>
    %181 = vector.extract_strided_slice %180 {offsets = [0, 0], sizes = [8, 32], strides = [1, 1]} : vector<8x128xf32> to vector<8x32xf32>
    %182 = arith.negf %181 : vector<8x32xf32>
    %183 = math.exp %182 : vector<8x32xf32>
    %cst_48 = arith.constant 1.000000e+00 : f32
    %184 = vector.broadcast %cst_48 : f32 to vector<8x32xf32>
    %185 = arith.addf %184, %183 : vector<8x32xf32>
    %186 = arith.divf %184, %185 : vector<8x32xf32>
    %187 = vector.extract_strided_slice %180 {offsets = [0, 32], sizes = [8, 32], strides = [1, 1]} : vector<8x128xf32> to vector<8x32xf32>
    %188 = arith.negf %187 : vector<8x32xf32>
    %189 = math.exp %188 : vector<8x32xf32>
    %cst_49 = arith.constant 1.000000e+00 : f32
    %190 = vector.broadcast %cst_49 : f32 to vector<8x32xf32>
    %191 = arith.addf %190, %189 : vector<8x32xf32>
    %192 = arith.divf %190, %191 : vector<8x32xf32>
    %193 = vector.extract_strided_slice %180 {offsets = [0, 64], sizes = [8, 32], strides = [1, 1]} : vector<8x128xf32> to vector<8x32xf32>
    %194 = math.tanh %193 : vector<8x32xf32>
    %195 = vector.extract_strided_slice %180 {offsets = [0, 96], sizes = [8, 32], strides = [1, 1]} : vector<8x128xf32> to vector<8x32xf32>
    %196 = arith.negf %195 : vector<8x32xf32>
    %197 = math.exp %196 : vector<8x32xf32>
    %cst_50 = arith.constant 1.000000e+00 : f32
    %198 = vector.broadcast %cst_50 : f32 to vector<8x32xf32>
    %199 = arith.addf %198, %197 : vector<8x32xf32>
    %200 = arith.divf %198, %199 : vector<8x32xf32>
    %201 = arith.mulf %192, %170 : vector<8x32xf32>
    %202 = arith.mulf %186, %194 : vector<8x32xf32>
    %203 = arith.addf %201, %202 : vector<8x32xf32>
    %204 = math.tanh %203 : vector<8x32xf32>
    %205 = arith.mulf %200, %204 : vector<8x32xf32>
    %206 = arith.index_cast %176 : i32 to index
    %c0_51 = arith.constant 0 : index
    %207 = vector.load %arg10[%206, %c0_51] : memref<64x32xf32, #tpu.memory_space<vmem>>, vector<8x32xf32>
    tpu.vector_store %arg10[%206, %c0_51], %205 {strides = array<i32>} : memref<64x32xf32, #tpu.memory_space<vmem>>, vector<8x32xf32>,
    %c6_i32 = arith.constant 6 : i32
    %c8_i32_52 = arith.constant 8 : i32
    %208 = arith.muli %c6_i32, %c8_i32_52 : i32
    %209 = tpu.assume_multiple %208, 8 : i32
    %210 = arith.index_cast %209 : i32 to index
    %c0_53 = arith.constant 0 : index
    %211 = vector.load %arg9[%210, %c0_53] : memref<64x128xf32, #tpu.memory_space<vmem>>, vector<8x128xf32>
    %cst_54 = arith.constant dense<0.000000e+00> : vector<8x128xf32>
    %212 = tpu.matmul %205, %7, %cst_54 {dimension_numbers = #tpu.dot_dimension_numbers<[1], [0], [0], [1], [0, 0, 1, 1], [], []>} : vector<8x32xf32>, vector<32x128xf32>, vector<8x128xf32> -> vector<8x128xf32>
    %213 = arith.addf %211, %212 : vector<8x128xf32>
    %214 = vector.extract_strided_slice %213 {offsets = [0, 0], sizes = [8, 32], strides = [1, 1]} : vector<8x128xf32> to vector<8x32xf32>
    %215 = arith.negf %214 : vector<8x32xf32>
    %216 = math.exp %215 : vector<8x32xf32>
    %cst_55 = arith.constant 1.000000e+00 : f32
    %217 = vector.broadcast %cst_55 : f32 to vector<8x32xf32>
    %218 = arith.addf %217, %216 : vector<8x32xf32>
    %219 = arith.divf %217, %218 : vector<8x32xf32>
    %220 = vector.extract_strided_slice %213 {offsets = [0, 32], sizes = [8, 32], strides = [1, 1]} : vector<8x128xf32> to vector<8x32xf32>
    %221 = arith.negf %220 : vector<8x32xf32>
    %222 = math.exp %221 : vector<8x32xf32>
    %cst_56 = arith.constant 1.000000e+00 : f32
    %223 = vector.broadcast %cst_56 : f32 to vector<8x32xf32>
    %224 = arith.addf %223, %222 : vector<8x32xf32>
    %225 = arith.divf %223, %224 : vector<8x32xf32>
    %226 = vector.extract_strided_slice %213 {offsets = [0, 64], sizes = [8, 32], strides = [1, 1]} : vector<8x128xf32> to vector<8x32xf32>
    %227 = math.tanh %226 : vector<8x32xf32>
    %228 = vector.extract_strided_slice %213 {offsets = [0, 96], sizes = [8, 32], strides = [1, 1]} : vector<8x128xf32> to vector<8x32xf32>
    %229 = arith.negf %228 : vector<8x32xf32>
    %230 = math.exp %229 : vector<8x32xf32>
    %cst_57 = arith.constant 1.000000e+00 : f32
    %231 = vector.broadcast %cst_57 : f32 to vector<8x32xf32>
    %232 = arith.addf %231, %230 : vector<8x32xf32>
    %233 = arith.divf %231, %232 : vector<8x32xf32>
    %234 = arith.mulf %225, %203 : vector<8x32xf32>
    %235 = arith.mulf %219, %227 : vector<8x32xf32>
    %236 = arith.addf %234, %235 : vector<8x32xf32>
    %237 = math.tanh %236 : vector<8x32xf32>
    %238 = arith.mulf %233, %237 : vector<8x32xf32>
    %239 = arith.index_cast %209 : i32 to index
    %c0_58 = arith.constant 0 : index
    %240 = vector.load %arg10[%239, %c0_58] : memref<64x32xf32, #tpu.memory_space<vmem>>, vector<8x32xf32>
    tpu.vector_store %arg10[%239, %c0_58], %238 {strides = array<i32>} : memref<64x32xf32, #tpu.memory_space<vmem>>, vector<8x32xf32>,
    %c7_i32 = arith.constant 7 : i32
    %c8_i32_59 = arith.constant 8 : i32
    %241 = arith.muli %c7_i32, %c8_i32_59 : i32
    %242 = tpu.assume_multiple %241, 8 : i32
    %243 = arith.index_cast %242 : i32 to index
    %c0_60 = arith.constant 0 : index
    %244 = vector.load %arg9[%243, %c0_60] : memref<64x128xf32, #tpu.memory_space<vmem>>, vector<8x128xf32>
    %cst_61 = arith.constant dense<0.000000e+00> : vector<8x128xf32>
    %245 = tpu.matmul %238, %7, %cst_61 {dimension_numbers = #tpu.dot_dimension_numbers<[1], [0], [0], [1], [0, 0, 1, 1], [], []>} : vector<8x32xf32>, vector<32x128xf32>, vector<8x128xf32> -> vector<8x128xf32>
    %246 = arith.addf %244, %245 : vector<8x128xf32>
    %247 = vector.extract_strided_slice %246 {offsets = [0, 0], sizes = [8, 32], strides = [1, 1]} : vector<8x128xf32> to vector<8x32xf32>
    %248 = arith.negf %247 : vector<8x32xf32>
    %249 = math.exp %248 : vector<8x32xf32>
    %cst_62 = arith.constant 1.000000e+00 : f32
    %250 = vector.broadcast %cst_62 : f32 to vector<8x32xf32>
    %251 = arith.addf %250, %249 : vector<8x32xf32>
    %252 = arith.divf %250, %251 : vector<8x32xf32>
    %253 = vector.extract_strided_slice %246 {offsets = [0, 32], sizes = [8, 32], strides = [1, 1]} : vector<8x128xf32> to vector<8x32xf32>
    %254 = arith.negf %253 : vector<8x32xf32>
    %255 = math.exp %254 : vector<8x32xf32>
    %cst_63 = arith.constant 1.000000e+00 : f32
    %256 = vector.broadcast %cst_63 : f32 to vector<8x32xf32>
    %257 = arith.addf %256, %255 : vector<8x32xf32>
    %258 = arith.divf %256, %257 : vector<8x32xf32>
    %259 = vector.extract_strided_slice %246 {offsets = [0, 64], sizes = [8, 32], strides = [1, 1]} : vector<8x128xf32> to vector<8x32xf32>
    %260 = math.tanh %259 : vector<8x32xf32>
    %261 = vector.extract_strided_slice %246 {offsets = [0, 96], sizes = [8, 32], strides = [1, 1]} : vector<8x128xf32> to vector<8x32xf32>
    %262 = arith.negf %261 : vector<8x32xf32>
    %263 = math.exp %262 : vector<8x32xf32>
    %cst_64 = arith.constant 1.000000e+00 : f32
    %264 = vector.broadcast %cst_64 : f32 to vector<8x32xf32>
    %265 = arith.addf %264, %263 : vector<8x32xf32>
    %266 = arith.divf %264, %265 : vector<8x32xf32>
    %267 = arith.mulf %258, %236 : vector<8x32xf32>
    %268 = arith.mulf %252, %260 : vector<8x32xf32>
    %269 = arith.addf %267, %268 : vector<8x32xf32>
    %270 = math.tanh %269 : vector<8x32xf32>
    %271 = arith.mulf %266, %270 : vector<8x32xf32>
    %272 = arith.index_cast %242 : i32 to index
    %c0_65 = arith.constant 0 : index
    %273 = vector.load %arg10[%272, %c0_65] : memref<64x32xf32, #tpu.memory_space<vmem>>, vector<8x32xf32>
    tpu.vector_store %arg10[%272, %c0_65], %271 {strides = array<i32>} : memref<64x32xf32, #tpu.memory_space<vmem>>, vector<8x32xf32>,
    %c8_i32_66 = arith.constant 8 : i32
    %c0_67 = arith.constant 0 : index
    %c0_68 = arith.constant 0 : index
    %274 = vector.load %arg10[%c0_67, %c0_68] : memref<64x32xf32, #tpu.memory_space<vmem>>, vector<64x32xf32>
    %c0_69 = arith.constant 0 : index
    %c0_70 = arith.constant 0 : index
    %275 = vector.load %arg2[%c0_69, %c0_70] : memref<64x1xf32, #tpu.memory_space<vmem>>, vector<64x1xf32>
    %276 = vector.broadcast %275 : vector<64x1xf32> to vector<64x32xf32>
    %277 = arith.mulf %274, %276 : vector<64x32xf32>
    %c0_71 = arith.constant 0 : index
    %c0_72 = arith.constant 0 : index
    %278 = vector.load %arg6[%c0_71, %c0_72] : memref<32x128xf32, #tpu.memory_space<vmem>>, vector<32x128xf32>
    %cst_73 = arith.constant dense<0.000000e+00> : vector<64x128xf32>
    %279 = tpu.matmul %277, %278, %cst_73 {dimension_numbers = #tpu.dot_dimension_numbers<[1], [0], [0], [1], [0, 0, 1, 1], [], []>} : vector<64x32xf32>, vector<32x128xf32>, vector<64x128xf32> -> vector<64x128xf32>
    %c0_74 = arith.constant 0 : index
    %c0_75 = arith.constant 0 : index
    %280 = vector.load %arg7[%c0_74, %c0_75] : memref<1x128xf32, #tpu.memory_space<vmem>>, vector<1x128xf32>
    %281 = vector.broadcast %280 : vector<1x128xf32> to vector<64x128xf32>
    %282 = arith.addf %279, %281 : vector<64x128xf32>
    %cst_76 = arith.constant dense<0xFF800000> : vector<64xf32>
    %283 = vector.multi_reduction <maximumf>, %282, %cst_76 [1] : vector<64x128xf32> to vector<64xf32>
    %284 = vector.shape_cast %283 : vector<64xf32> to vector<64x1xf32>
    %285 = vector.broadcast %284 : vector<64x1xf32> to vector<64x128xf32>
    %286 = arith.subf %282, %285 : vector<64x128xf32>
    %287 = math.exp %286 : vector<64x128xf32>
    %cst_77 = arith.constant dense<0.000000e+00> : vector<64xf32>
    %288 = vector.multi_reduction <add>, %287, %cst_77 [1] : vector<64x128xf32> to vector<64xf32>
    %289 = vector.shape_cast %288 : vector<64xf32> to vector<64x1xf32>
    %290 = tpu.reciprocal %289 {approx = true} : vector<64x1xf32> -> vector<64x1xf32>
    %291 = arith.mulf %289, %290 : vector<64x1xf32>
    %cst_78 = arith.constant 2.000000e+00 : f32
    %292 = vector.broadcast %cst_78 : f32 to vector<64x1xf32>
    %293 = arith.subf %292, %291 : vector<64x1xf32>
    %294 = arith.mulf %290, %293 : vector<64x1xf32>
    %295 = vector.broadcast %294 : vector<64x1xf32> to vector<64x128xf32>
    %296 = arith.mulf %287, %295 : vector<64x128xf32>
    %c0_79 = arith.constant 0 : index
    %c0_80 = arith.constant 0 : index
    %297 = vector.load %arg8[%c0_79, %c0_80] : memref<64x128xf32, #tpu.memory_space<vmem>>, vector<64x128xf32>
    tpu.vector_store %arg8[%c0_79, %c0_80], %296 {strides = array<i32>} : memref<64x128xf32, #tpu.memory_space<vmem>>, vector<64x128xf32>,
    return
  }
  func.func @transform_0(%arg0: i32) -> (i32, i32) {
    %c0_i32 = arith.constant 0 : i32
    %c0_i32_0 = arith.constant 0 : i32
    %c0_i32_1 = arith.constant 0 : i32
    return %c0_i32, %c0_i32_0 : i32, i32
  }
  func.func @transform_1(%arg0: i32) -> (i32, i32) {
    %c0_i32 = arith.constant 0 : i32
    %c0_i32_0 = arith.constant 0 : i32
    %c0_i32_1 = arith.constant 0 : i32
    return %c0_i32, %c0_i32_0 : i32, i32
  }
  func.func @transform_2(%arg0: i32) -> (i32, i32) {
    %c0_i32 = arith.constant 0 : i32
    %c0_i32_0 = arith.constant 0 : i32
    %c0_i32_1 = arith.constant 0 : i32
    return %c0_i32, %c0_i32_0 : i32, i32
  }
  func.func @transform_3(%arg0: i32) -> (i32, i32) {
    %c0_i32 = arith.constant 0 : i32
    %c0_i32_0 = arith.constant 0 : i32
    %c0_i32_1 = arith.constant 0 : i32
    return %c0_i32, %c0_i32_0 : i32, i32
  }
  func.func @transform_4(%arg0: i32) -> (i32, i32) {
    %c0_i32 = arith.constant 0 : i32
    %c0_i32_0 = arith.constant 0 : i32
    %c0_i32_1 = arith.constant 0 : i32
    return %c0_i32, %c0_i32_0 : i32, i32
  }
  func.func @transform_5(%arg0: i32) -> (i32, i32) {
    %c0_i32 = arith.constant 0 : i32
    %c0_i32_0 = arith.constant 0 : i32
    %c0_i32_1 = arith.constant 0 : i32
    return %c0_i32, %c0_i32_0 : i32, i32
  }
  func.func @transform_6(%arg0: i32) -> (i32, i32) {
    %c0_i32 = arith.constant 0 : i32
    %c0_i32_0 = arith.constant 0 : i32
    %c0_i32_1 = arith.constant 0 : i32
    return %c0_i32, %c0_i32_0 : i32, i32
  }
  func.func @transform_7(%arg0: i32) -> (i32, i32) {
    %c0_i32 = arith.constant 0 : i32
    %c0_i32_0 = arith.constant 0 : i32
    %c0_i32_1 = arith.constant 0 : i32
    return %c0_i32, %c0_i32_0 : i32, i32
  }
}

</mosaic_0001>

<bundles_post_ra>
// kernel: character_lstm_forward.1
= control target key start
LH: loop header
LB: loop body
LE: loop exit
PB: predicated region body
PF: predicated region fallthrough
CT: control target
= control target key end

     0   :  { %vm42_vm0 = vcmask 64512   ;;  %v1714_v8 = vmov 0.0|0.0   ;;  %vm1715_vm1 = vmmov 0   ;;  %v1716_v14 = vmov 0.0   ;;  %s1717_s23 = smov 64   ;;  %s2011_s2 = inlined_call_operand.vmem [shape: f32[8,128], index: 2, kind: input, shape index: {}]   ;;  %s2012_s0 = inlined_call_operand.vmem [shape: f32[64,8], index: 0, kind: input, shape index: {}]   ;;  %s2013_s3 = inlined_call_operand.vmem [shape: f32[32,128], index: 3, kind: input, shape index: {}]   ;;  %s2014_s4 = inlined_call_operand.vmem [shape: f32[1,128], index: 4, kind: input, shape index: {}]   ;;  %s2015_s1 = inlined_call_operand.vmem [shape: f32[64,1], index: 1, kind: input, shape index: {}]   ;;  %s2016_s5 = inlined_call_operand.vmem [shape: f32[32,128], index: 5, kind: input, shape index: {}]   ;;  %s2017_s6 = inlined_call_operand.vmem [shape: f32[1,128], index: 6, kind: input, shape index: {}]   ;;  %s2018_s7 = inlined_call_operand.vmem [shape: f32[64,128], index: 7, kind: output, shape index: {}]  }
   0x1   :  { %v34_v0 = vld [vmem:[%s2011_s2] sm:$0xff]  ;;  %v31_v2 = vld [vmem:[%s2012_s0 + $0x28] sm:$0xff]  ;;  %v32_v5 = vld [vmem:[%s2012_s0 + $0x30] sm:$0xff]  ;;  %vm185_vm2 = vcmask 261120  }
   0x2   :  { %v30_v1 = vld [vmem:[%s2012_s0 + $0x20] sm:$0xff]  ;;  %1608 = vmatprep.subr.mxu1 %v34_v0  ;;  %v181_v4 = vld [vmem:[%s2013_s3 + $0x8] sm:$0xff]  ;;  %1430 = vmatprep.subr.mxu0 %v34_v0  ;;  %v182_v10 = vld [vmem:[%s2013_s3 + $0x10] sm:$0xff] }
   0x3   :  { %1438 = vmatprep.mubr.msk.f32.mxu1 %vm42_vm0, %v30_v1  ;;  %v180_v3 = vld [vmem:[%s2013_s3] sm:$0xff]  ;;  %1609 = vmatpush3.msra.mxu1 %v34_v0  ;;  %v27_v9 = vld [vmem:[%s2012_s0 + $0x8] sm:$0xff]  ;;  %v183_v11 = vld [vmem:[%s2013_s3 + $0x18] sm:$0xff] }
   0x4   :  { %v1779_v6 = vpack.c.bf16 %v181_v4, %v180_v3  ;;  %v26_v7 = vld [vmem:[%s2012_s0] sm:$0xff]  ;;  %1439 = vmatmul.mubr.msk.f32.vlgmr.msra.gmra.mrb[0].mxu1 %vm42_vm0, %v31_v2  ;;  %1552 = vmatprep.subr.bf16.mxu1 %v1714_v8  ;;  %v33_v12 = vld [vmem:[%s2012_s0 + $0x38] sm:$0xff]  ;;  %v1800_v13 = vpack.c.bf16 %v183_v11, %v182_v10  ;;  %v28_v54 = vld [vmem:[%s2012_s0 + $0x10] sm:$0xff] }
   0x5   :  { %1441 = vmatprep.mubr.msk.f32.mxu1 %vm42_vm0, %v32_v5  ;;  %1431 = vmatpush3.msra.mxu0 %v34_v0  ;;  %v1829_v18 = vld [vmem:[%s2014_s4] ss:$0 sm:$0xff]  ;;  %s1718_s4 = smov 32   ;;  %v29_v55 = vld [vmem:[%s2012_s0 + $0x18] sm:$0xff] }
   0x6   :  { %1554 = vmatpush3.bf16.msra.mxu1 %v1779_v6  ;;  %1432 = vmatprep.mubr.msk.f32.mxu0 %vm42_vm0, %v26_v7 }
   0x7   :  { %1555 = vmatprep.subr.bf16.mxu1 %v1714_v8  ;;  %1433 = vmatmul.mubr.msk.f32.vlgmr.msra.gmra.mrb[0].mxu0 %vm42_vm0, %v27_v9 }
   0x8   :  { %1442 = vmatmul.mubr.msk.f32.gmra.mrb[2].mxu1 %vm42_vm0, %v33_v12  ;;  %1564 = vmatprep.subr.bf16.mxu0 %v1714_v8 }
   0x9   :  { %1452 = vmatprep.mubr.msk.f32.mxu1 %vm1715_vm1, %v1716_v14  ;;  %1566 = vmatpush3.bf16.msra.mxu0 %v1779_v6 }
   0xa   :  { %1557 = vmatpush3.bf16.msra.mxu1 %v1800_v13  ;;  %1567 = vmatprep.subr.bf16.mxu0 %v1714_v8 }
   0xb   :  { %1558 = vmatprep.subr.bf16.mxu1 %v1714_v8  ;;  %1435 = vmatprep.mubr.msk.f32.mxu0 %vm42_vm0, %v28_v54 }
   0xc   :  { %1436 = vmatmul.mubr.msk.f32.gmra.mrb[2].mxu0 %vm42_vm0, %v29_v55 }
   0xd   :  { %1453 = vmatmul.mubr.f32.vlgmr.msra.gmra.mrb[4].mxu1 %v1716_v14  ;;  %1569 = vmatpush3.bf16.msra.mxu0 %v1800_v13 }
   0xe   :  { %1560 = vmatpush3.bf16.msra.mxu1 %v1779_v6  ;;  %1463 = vmatprep.mubr.msk.f32.mxu1 %vm1715_vm1, %v1716_v14 }
   0xf   :  { %1561 = vmatprep.subr.bf16.mxu1 %v1714_v8  ;;  %1576 = vmatprep.subr.bf16.mxu0 %v1714_v8 }
  0x10   :  { %1474 = vmatprep.mubr.msk.f32.mxu0 %vm1715_vm1, %v1716_v14 }
  0x12   :  { %1563 = vmatpush3.bf16.msra.mxu1 %v1800_v13 }
  0x13   :  { %1570 = vmatprep.subr.bf16.mxu1 %v1714_v8 }
  0xd7   :  { %v1822_v15 = vpop.f32.mrb[0].mxu1 }
  0xd8   :  { %v1824_v16 = vpop.f32.mrb[1].mxu1 }
  0xda   :  { %v1434_v17 = vpop.f32.mrb[0].mxu0 }
  0xdb   :  { %v1831_v19 = vpop.f32.mrb[2].mxu1  ;;  %v133_v20 = vpop.f32.mrb[1].mxu0  ;;  %v139_v40 = vadd.f32 %v1434_v17, %v1829_v18 }
  0xdc   :  { %v1833_v21 = vpop.f32.mrb[3].mxu1  ;;  %v134_v22 = vadd.f32 %v1829_v18, %v133_v20 }
  0xdf   :  { %v1437_v59 = vpop.f32.mrb[2].mxu0 }
  0xe0   :  { %v255_v23 = vpop.f32.mrb[4].mxu1  ;;  %v143_v60 = vpop.f32.mrb[3].mxu0 }
  0xe1   :  { %v259_v24 = vadd.f32 %v255_v23, %v134_v22  ;;  %v1454_v25 = vpop.f32.mrb[5].mxu1  ;;  %v144_v62 = vadd.f32 %v1829_v18, %v143_v60  ;;  %v159_v60 = vadd.f32 %v1822_v15, %v1829_v18 }
  0xe2   :  { %v149_v25 = vadd.f32 %v1437_v59, %v1829_v18 }
  0xe3   :  { %1618 = vtanh.f32 %v259_v24  ;;  %v1345_v27 = vmul.f32 -1.442695, %v259_v24 }
  0xe5   :  { %1620 = vpow2.f32 %v1345_v27 }
  0xed   :  { %v1619_v26 = vpop.eup %1618 }
  0xee   :  { %269 = vrot.lane.b32.xlu0 %v1619_v26, %s1717_s23 }
  0xef   :  { %v1621_v28 = vpop.eup %1620 }
  0xf0   :  { %v263_v29 = vadd.f32 1.0, %v1621_v28 }
  0xf2   :  { %1622 = vrcp.f32 %v263_v29 }
  0xfc   :  { %v1623_v30 = vpop.eup %1622 }
  0xfd   :  { %v267_v33 = vmul.f32 0.0, %v1623_v30 }
 0x160   :  { %v270_v31 = vpop.permute.xlu0 %269 }
 0x161   :  { %v272_v32 = vmul.f32 %v1623_v30, %v270_v31 }
 0x163   :  { %274 = vrot.lane.b32.xlu0 %v272_v32, %s1718_s4 }
 0x1d5   :  { %v275_v34 = vpop.permute.xlu0 %274 }
 0x1d6   :  { %v277_v35 = vadd.f32 %v275_v34, %v267_v33 }
 0x1d8   :  { %1624 = vtanh.f32 %v277_v35 }
 0x1e2   :  { %v1625_v36 = vpop.eup %1624 }
 0x1e3   :  { %280 = vrot.lane.b32.xlu1 %v1625_v36, %s1717_s23 }
 0x255   :  { %v281_v37 = vpop.permute.xlu1 %280 }
 0x256   :  { %v283_v38 = vmul.f32 %v1623_v30, %v281_v37 }
 0x258   :  { %285 = vrot.lane.b32.xlu1 %v283_v38, %s1718_s4 }
 0x2ca   :  { %v286_v39 = vpop.permute.xlu1 %285 }
 0x2cb   :  { %288 = vst.msk [vmem:[#allocation3] sm:$0xff] %vm185_vm2, %v286_v39  ;;  %1464 = vmatmul.mubr.msk.f32.vlgmr.msra.gmra.mrb[6].mxu1 %vm185_vm2, %v286_v39 }
 0x2cc   :  { %1572 = vmatpush3.bf16.msra.mxu1 %v1779_v6  ;;  %1485 = vmatprep.mubr.msk.f32.mxu1 %vm1715_vm1, %v1716_v14 }
 0x2cd   :  { %1573 = vmatprep.subr.bf16.mxu1 %v1714_v8 }
 0x2d0   :  { %1575 = vmatpush3.bf16.msra.mxu1 %v1800_v13 }
 0x2d1   :  { %1582 = vmatprep.subr.bf16.mxu1 %v1714_v8 }
 0x39e   :  { %v359_v41 = vpop.f32.mrb[6].mxu1 }
 0x39f   :  { %v363_v42 = vadd.f32 %v359_v41, %v139_v40  ;;  %v1465_v43 = vpop.f32.mrb[7].mxu1 }
 0x3a0   :  { %v154_v43 = vadd.f32 %v1829_v18, %v1824_v16 }
 0x3a1   :  { %1626 = vtanh.f32 %v363_v42  ;;  %v1347_v45 = vmul.f32 -1.442695, %v363_v42 }
 0x3a3   :  { %1628 = vpow2.f32 %v1347_v45 }
 0x3ab   :  { %v1627_v44 = vpop.eup %1626 }
 0x3ac   :  { %373 = vrot.lane.b32.xlu0 %v1627_v44, %s1717_s23 }
 0x3ad   :  { %v1629_v46 = vpop.eup %1628 }
 0x3ae   :  { %v367_v47 = vadd.f32 1.0, %v1629_v46 }
 0x3b0   :  { %1630 = vrcp.f32 %v367_v47 }
 0x3ba   :  { %v1631_v48 = vpop.eup %1630 }
 0x3bb   :  { %v371_v51 = vmul.f32 %v1631_v48, %v277_v35 }
 0x41e   :  { %v374_v49 = vpop.permute.xlu0 %373 }
 0x41f   :  { %v376_v50 = vmul.f32 %v1631_v48, %v374_v49 }
 0x421   :  { %378 = vrot.lane.b32.xlu1 %v376_v50, %s1718_s4 }
 0x493   :  { %v379_v52 = vpop.permute.xlu1 %378 }
 0x494   :  { %v381_v53 = vadd.f32 %v379_v52, %v371_v51 }
 0x496   :  { %1632 = vtanh.f32 %v381_v53 }
 0x4a0   :  { %v1633_v56 = vpop.eup %1632 }
 0x4a1   :  { %384 = vrot.lane.b32.xlu0 %v1633_v56, %s1717_s23 }
 0x513   :  { %v385_v57 = vpop.permute.xlu0 %384 }
 0x514   :  { %v387_v58 = vmul.f32 %v1631_v48, %v385_v57 }
 0x516   :  { %389 = vrot.lane.b32.xlu1 %v387_v58, %s1718_s4 }
 0x588   :  { %v390_v61 = vpop.permute.xlu1 %389 }
 0x589   :  { %393 = vst.msk [vmem:[#allocation3 + $0x8] sm:$0xff] %vm185_vm2, %v390_v61  ;;  %1475 = vmatmul.mubr.msk.f32.vlgmr.msra.gmra.mrb[4].mxu0 %vm185_vm2, %v390_v61 }
 0x58a   :  { %1578 = vmatpush3.bf16.msra.mxu0 %v1779_v6  ;;  %1496 = vmatprep.mubr.msk.f32.mxu0 %vm1715_vm1, %v1716_v14 }
 0x58b   :  { %1579 = vmatprep.subr.bf16.mxu0 %v1714_v8 }
 0x58e   :  { %1581 = vmatpush3.bf16.msra.mxu0 %v1800_v13 }
 0x58f   :  { %1588 = vmatprep.subr.bf16.mxu0 %v1714_v8 }
 0x65c   :  { %v464_v63 = vpop.f32.mrb[4].mxu0 }
 0x65d   :  { %v468_v0 = vadd.f32 %v464_v63, %v144_v62  ;;  %v1476_v1 = vpop.f32.mrb[5].mxu0 }
 0x65f   :  { %1634 = vtanh.f32 %v468_v0  ;;  %v1349_v3 = vmul.f32 -1.442695, %v468_v0 }
 0x661   :  { %1636 = vpow2.f32 %v1349_v3 }
 0x669   :  { %v1635_v2 = vpop.eup %1634 }
 0x66a   :  { %478 = vrot.lane.b32.xlu0 %v1635_v2, %s1717_s23 }
 0x66b   :  { %v1637_v4 = vpop.eup %1636 }
 0x66c   :  { %v472_v5 = vadd.f32 1.0, %v1637_v4 }
 0x66e   :  { %1638 = vrcp.f32 %v472_v5 }
 0x678   :  { %v1639_v7 = vpop.eup %1638 }
 0x679   :  { %v476_v11 = vmul.f32 %v1639_v7, %v381_v53 }
 0x6dc   :  { %v479_v9 = vpop.permute.xlu0 %478 }
 0x6dd   :  { %v481_v10 = vmul.f32 %v1639_v7, %v479_v9 }
 0x6df   :  { %483 = vrot.lane.b32.xlu1 %v481_v10, %s1718_s4 }
 0x751   :  { %v484_v12 = vpop.permute.xlu1 %483 }
 0x752   :  { %v486_v17 = vadd.f32 %v484_v12, %v476_v11  ;;  %v164_v11 = vadd.f32 %v1829_v18, %v1833_v21 }
 0x754   :  { %1640 = vtanh.f32 %v486_v17 }
 0x75e   :  { %v1641_v20 = vpop.eup %1640 }
 0x75f   :  { %489 = vrot.lane.b32.xlu0 %v1641_v20, %s1717_s23 }
 0x7d1   :  { %v490_v22 = vpop.permute.xlu0 %489 }
 0x7d2   :  { %v492_v23 = vmul.f32 %v1639_v7, %v490_v22 }
 0x7d4   :  { %494 = vrot.lane.b32.xlu1 %v492_v23, %s1718_s4 }
 0x846   :  { %v495_v24 = vpop.permute.xlu1 %494 }
 0x847   :  { %498 = vst.msk [vmem:[#allocation3 + $0x10] sm:$0xff] %vm185_vm2, %v495_v24  ;;  %1486 = vmatmul.mubr.msk.f32.vlgmr.msra.gmra.mrb[8].mxu1 %vm185_vm2, %v495_v24 }
 0x848   :  { %1584 = vmatpush3.bf16.msra.mxu1 %v1779_v6  ;;  %1507 = vmatprep.mubr.msk.f32.mxu1 %vm1715_vm1, %v1716_v14 }
 0x849   :  { %1585 = vmatprep.subr.bf16.mxu1 %v1714_v8 }
 0x84c   :  { %1587 = vmatpush3.bf16.msra.mxu1 %v1800_v13 }
 0x84d   :  { %1594 = vmatprep.subr.bf16.mxu1 %v1714_v8 }
 0x91a   :  { %v569_v26 = vpop.f32.mrb[8].mxu1 }
 0x91b   :  { %v573_v27 = vadd.f32 %v569_v26, %v149_v25  ;;  %v1487_v28 = vpop.f32.mrb[9].mxu1 }
 0x91d   :  { %1642 = vtanh.f32 %v573_v27  ;;  %v1351_v30 = vmul.f32 -1.442695, %v573_v27 }
 0x91f   :  { %1644 = vpow2.f32 %v1351_v30 }
 0x927   :  { %v1643_v29 = vpop.eup %1642 }
 0x928   :  { %583 = vrot.lane.b32.xlu0 %v1643_v29, %s1717_s23 }
 0x929   :  { %v1645_v31 = vpop.eup %1644 }
 0x92a   :  { %v577_v32 = vadd.f32 1.0, %v1645_v31 }
 0x92c   :  { %1646 = vrcp.f32 %v577_v32 }
 0x936   :  { %v1647_v33 = vpop.eup %1646 }
 0x937   :  { %v581_v36 = vmul.f32 %v1647_v33, %v486_v17 }
 0x99a   :  { %v584_v34 = vpop.permute.xlu0 %583 }
 0x99b   :  { %v586_v35 = vmul.f32 %v1647_v33, %v584_v34 }
 0x99d   :  { %588 = vrot.lane.b32.xlu1 %v586_v35, %s1718_s4  ;;  %v169_v35 = vadd.f32 %v1831_v19, %v1829_v18  ;;  %v1032_v18 = vld [vmem:[%s2015_s1] sm:$0xff]  ;;  %v1034_v19 = vld [vmem:[%s2015_s1 + $0x10] sm:$0xff] }
 0xa0f   :  { %v589_v37 = vpop.permute.xlu1 %588 }
 0xa10   :  { %v591_v38 = vadd.f32 %v589_v37, %v581_v36 }
 0xa12   :  { %1648 = vtanh.f32 %v591_v38 }
 0xa1c   :  { %v1649_v39 = vpop.eup %1648 }
 0xa1d   :  { %594 = vrot.lane.b32.xlu0 %v1649_v39, %s1717_s23  ;;  %v1719_v39 = vmov 0  }
 0xa1e   :  { %1616 = vset.pattern.permute.xlu1 %v1719_v39  ;;  %1617 = vset.pattern.permute.xlu0 %v1719_v39 }
 0xa8f   :  { %v595_v40 = vpop.permute.xlu0 %594 }
 0xa90   :  { %v597_v41 = vmul.f32 %v1647_v33, %v595_v40 }
 0xa92   :  { %599 = vrot.lane.b32.xlu1 %v597_v41, %s1718_s4 }
 0xb04   :  { %v600_v42 = vpop.permute.xlu1 %599 }
 0xb05   :  { %603 = vst.msk [vmem:[#allocation3 + $0x18] sm:$0xff] %vm185_vm2, %v600_v42  ;;  %1497 = vmatmul.mubr.msk.f32.vlgmr.msra.gmra.mrb[6].mxu0 %vm185_vm2, %v600_v42 }
 0xb06   :  { %1590 = vmatpush3.bf16.msra.mxu0 %v1779_v6  ;;  %1518 = vmatprep.mubr.msk.f32.mxu0 %vm1715_vm1, %v1716_v14 }
 0xb07   :  { %1591 = vmatprep.subr.bf16.mxu0 %v1714_v8 }
 0xb0a   :  { %1593 = vmatpush3.bf16.msra.mxu0 %v1800_v13 }
 0xbd8   :  { %v674_v44 = vpop.f32.mrb[6].mxu0 }
 0xbd9   :  { %v678_v45 = vadd.f32 %v674_v44, %v154_v43  ;;  %v1498_v46 = vpop.f32.mrb[7].mxu0 }
 0xbdb   :  { %1650 = vtanh.f32 %v678_v45  ;;  %v1353_v48 = vmul.f32 -1.442695, %v678_v45 }
 0xbdd   :  { %1652 = vpow2.f32 %v1353_v48  ;;  %v1037_v48 = vld [vmem:[%s2015_s1 + $0x28] sm:$0xff] }
 0xbe5   :  { %v1651_v47 = vpop.eup %1650 }
 0xbe6   :  { %688 = vrot.lane.b32.xlu0 %v1651_v47, %s1717_s23  ;;  %v1035_v47 = vld [vmem:[%s2015_s1 + $0x18] sm:$0xff] }
 0xbe7   :  { %v1653_v49 = vpop.eup %1652 }
 0xbe8   :  { %v682_v50 = vadd.f32 1.0, %v1653_v49  ;;  %v1038_v49 = vld [vmem:[%s2015_s1 + $0x30] sm:$0xff] }
 0xbea   :  { %1654 = vrcp.f32 %v682_v50 }
 0xbf4   :  { %v1655_v51 = vpop.eup %1654 }
 0xbf5   :  { %v686_v54 = vmul.f32 %v1655_v51, %v591_v38 }
 0xc58   :  { %v689_v52 = vpop.permute.xlu0 %688 }
 0xc59   :  { %v691_v53 = vmul.f32 %v1655_v51, %v689_v52 }
 0xc5b   :  { %693 = vrot.lane.b32.xlu1 %v691_v53, %s1718_s4  ;;  %v1088_v53 = vld [vmem:[%s2016_s5] sm:$0xff] }
 0xccd   :  { %v694_v55 = vpop.permute.xlu1 %693 }
 0xcce   :  { %v696_v16 = vadd.f32 %v694_v55, %v686_v54  ;;  %v1089_v54 = vld [vmem:[%s2016_s5 + $0x8] sm:$0xff]  ;;  %v1090_v55 = vld [vmem:[%s2016_s5 + $0x10] sm:$0xff] }
 0xcd0   :  { %1656 = vtanh.f32 %v696_v16 }
 0xcda   :  { %v1657_v56 = vpop.eup %1656 }
 0xcdb   :  { %699 = vrot.lane.b32.xlu0 %v1657_v56, %s1717_s23  ;;  %v1091_v56 = vld [vmem:[%s2016_s5 + $0x18] sm:$0xff] }
 0xd4d   :  { %v700_v57 = vpop.permute.xlu0 %699 }
 0xd4e   :  { %v702_v58 = vmul.f32 %v1655_v51, %v700_v57  ;;  %v1604_v57 = vpack.c.bf16 %v1091_v56, %v1090_v55 }
 0xd50   :  { %704 = vrot.lane.b32.xlu1 %v702_v58, %s1718_s4 }
 0xdc2   :  { %v705_v59 = vpop.permute.xlu1 %704 }
 0xdc3   :  { %708 = vst.msk [vmem:[#allocation3 + $0x20] sm:$0xff] %vm185_vm2, %v705_v59  ;;  %1508 = vmatmul.mubr.msk.f32.vlgmr.msra.gmra.mrb[10].mxu1 %vm185_vm2, %v705_v59  ;;  %v1033_v59 = vld [vmem:[%s2015_s1 + $0x8] sm:$0xff] }
 0xdc4   :  { %1596 = vmatpush3.bf16.msra.mxu1 %v1779_v6  ;;  %1529 = vmatprep.mubr.msk.f32.mxu1 %vm1715_vm1, %v1716_v14 }
 0xdc5   :  { %1597 = vmatprep.subr.bf16.mxu1 %v1714_v8 }
 0xdc8   :  { %1599 = vmatpush3.bf16.msra.mxu1 %v1800_v13 }
 0xe96   :  { %v779_v61 = vpop.f32.mrb[10].mxu1 }
 0xe97   :  { %v783_v62 = vadd.f32 %v779_v61, %v159_v60  ;;  %v1509_v63 = vpop.f32.mrb[11].mxu1  ;;  %v1024_v61 = vld [vmem:[#allocation3] sm:$0xff] }
 0xe98   :  { %v1036_v63 = vld [vmem:[%s2015_s1 + $0x20] sm:$0xff] }
 0xe99   :  { %1658 = vtanh.f32 %v783_v62  ;;  %v1355_v1 = vmul.f32 -1.442695, %v783_v62 }
 0xe9b   :  { %1660 = vpow2.f32 %v1355_v1 }
 0xea3   :  { %v1659_v0 = vpop.eup %1658 }
 0xea4   :  { %793 = vrot.lane.b32.xlu0 %v1659_v0, %s1717_s23 }
 0xea5   :  { %v1661_v6 = vpop.eup %1660 }
 0xea6   :  { %v787_v2 = vadd.f32 1.0, %v1661_v6  ;;  %v1039_v6 = vld [vmem:[%s2015_s1 + $0x38] sm:$0xff] }
 0xea8   :  { %1662 = vrcp.f32 %v787_v2 }
 0xeb2   :  { %v1663_v14 = vpop.eup %1662 }
 0xeb3   :  { %v791_v13 = vmul.f32 %v1663_v14, %v696_v16  ;;  %v1600_v16 = vpack.c.bf16 %v1089_v54, %v1088_v53 }
 0xeb5   :  { %1601 = vmatprep.subr.bf16.mxu0 %v1600_v16 }
 0xf16   :  { %v794_v3 = vpop.permute.xlu0 %793 }
 0xf17   :  { %v796_v8 = vmul.f32 %v1663_v14, %v794_v3  ;;  %v1025_v3 = vld [vmem:[#allocation3 + $0x8] sm:$0xff] }
 0xf19   :  { %798 = vrot.lane.b32.xlu1 %v796_v8, %s1718_s4 }
 0xf8b   :  { %v799_v4 = vpop.permute.xlu1 %798 }
 0xf8c   :  { %v801_v15 = vadd.f32 %v799_v4, %v791_v13  ;;  %v1026_v13 = vld [vmem:[#allocation3 + $0x10] sm:$0xff] }
 0xf8e   :  { %1664 = vtanh.f32 %v801_v15 }
 0xf98   :  { %v1665_v5 = vpop.eup %1664 }
 0xf99   :  { %804 = vrot.lane.b32.xlu0 %v1665_v5, %s1717_s23 }
0x100b   :  { %v805_v7 = vpop.permute.xlu0 %804 }
0x100c   :  { %v807_v9 = vmul.f32 %v1663_v14, %v805_v7  ;;  %v1027_v7 = vld [vmem:[#allocation3 + $0x18] sm:$0xff] }
0x100e   :  { %809 = vrot.lane.b32.xlu1 %v807_v9, %s1718_s4  ;;  %v1028_v9 = vld [vmem:[#allocation3 + $0x20] sm:$0xff] }
0x1080   :  { %v810_v10 = vpop.permute.xlu1 %809 }
0x1081   :  { %813 = vst.msk [vmem:[#allocation3 + $0x28] sm:$0xff] %vm185_vm2, %v810_v10  ;;  %1519 = vmatmul.mubr.msk.f32.vlgmr.msra.gmra.mrb[8].mxu0 %vm185_vm2, %v810_v10 }
0x1082   :  { %1603 = vmatpush3.bf16.msra.mxu0 %v1600_v16 }
0x1083   :  { %1605 = vmatprep.subr.bf16.mxu0 %v1604_v57 }
0x1086   :  { %1607 = vmatpush3.bf16.msra.mxu0 %v1604_v57 }
0x1154   :  { %v884_v12 = vpop.f32.mrb[8].mxu0 }
0x1155   :  { %v888_v17 = vadd.f32 %v884_v12, %v164_v11  ;;  %v1520_v20 = vpop.f32.mrb[9].mxu0 }
0x1156   :  { %v1029_v20 = vld [vmem:[#allocation3 + $0x28] sm:$0xff] }
0x1157   :  { %1666 = vtanh.f32 %v888_v17  ;;  %v1357_v23 = vmul.f32 -1.442695, %v888_v17 }
0x1159   :  { %1668 = vpow2.f32 %v1357_v23 }
0x1161   :  { %v1667_v22 = vpop.eup %1666 }
0x1162   :  { %898 = vrot.lane.b32.xlu0 %v1667_v22, %s1717_s23 }
0x1163   :  { %v1669_v24 = vpop.eup %1668 }
0x1164   :  { %v892_v25 = vadd.f32 1.0, %v1669_v24 }
0x1166   :  { %1670 = vrcp.f32 %v892_v25 }
0x1170   :  { %v1671_v26 = vpop.eup %1670 }
0x1171   :  { %v896_v29 = vmul.f32 %v1671_v26, %v801_v15 }
0x11d4   :  { %v899_v27 = vpop.permute.xlu0 %898 }
0x11d5   :  { %v901_v28 = vmul.f32 %v1671_v26, %v899_v27 }
0x11d7   :  { %903 = vrot.lane.b32.xlu1 %v901_v28, %s1718_s4 }
0x1249   :  { %v904_v30 = vpop.permute.xlu1 %903 }
0x124a   :  { %v906_v21 = vadd.f32 %v904_v30, %v896_v29  ;;  %v1360_v29 = vld [vmem:[%s2017_s6] ss:$0 sm:$0xff] }
0x124c   :  { %1672 = vtanh.f32 %v906_v21 }
0x1256   :  { %v1673_v31 = vpop.eup %1672 }
0x1257   :  { %909 = vrot.lane.b32.xlu0 %v1673_v31, %s1717_s23 }
0x12c9   :  { %v910_v32 = vpop.permute.xlu0 %909 }
0x12ca   :  { %v912_v33 = vmul.f32 %v1671_v26, %v910_v32 }
0x12cc   :  { %914 = vrot.lane.b32.xlu1 %v912_v33, %s1718_s4 }
0x133e   :  { %v915_v34 = vpop.permute.xlu1 %914 }
0x133f   :  { %918 = vst.msk [vmem:[#allocation3 + $0x30] sm:$0xff] %vm185_vm2, %v915_v34  ;;  %1530 = vmatmul.mubr.msk.f32.vlgmr.msra.gmra.mrb[12].mxu1 %vm185_vm2, %v915_v34 }
0x1346   :  { %v1030_v23 = vld [vmem:[#allocation3 + $0x30] sm:$0xff] }
0x1412   :  { %v989_v36 = vpop.f32.mrb[12].mxu1 }
0x1413   :  { %v993_v37 = vadd.f32 %v989_v36, %v169_v35  ;;  %v1531_v38 = vpop.f32.mrb[13].mxu1 }
0x1415   :  { %1674 = vtanh.f32 %v993_v37  ;;  %v1359_v41 = vmul.f32 -1.442695, %v993_v37 }
0x1417   :  { %1676 = vpow2.f32 %v1359_v41 }
0x141f   :  { %v1675_v40 = vpop.eup %1674 }
0x1420   :  { %1003 = vrot.lane.b32.xlu0 %v1675_v40, %s1717_s23 }
0x1421   :  { %v1677_v42 = vpop.eup %1676 }
0x1422   :  { %v997_v43 = vadd.f32 1.0, %v1677_v42 }
0x1424   :  { %1678 = vrcp.f32 %v997_v43 }
0x142e   :  { %v1679_v44 = vpop.eup %1678 }
0x142f   :  { %v1001_v50 = vmul.f32 %v1679_v44, %v906_v21 }
0x1492   :  { %v1004_v45 = vpop.permute.xlu0 %1003 }
0x1493   :  { %v1006_v46 = vmul.f32 %v1679_v44, %v1004_v45 }
0x1495   :  { %1008 = vrot.lane.b32.xlu1 %v1006_v46, %s1718_s4 }
0x1499   :  { %1042 = vperm.xlu1 %1616, %v1032_v18  }
0x149d   :  { %1052 = vperm.xlu1 %1616, %v1034_v19  }
0x14a1   :  { %1057 = vperm.xlu1 %1616, %v1035_v47  }
0x14a5   :  { %1067 = vperm.xlu1 %1616, %v1037_v48  }
0x14a9   :  { %1072 = vperm.xlu1 %1616, %v1038_v49  }
0x1507   :  { %v1009_v51 = vpop.permute.xlu1 %1008 }
0x1508   :  { %v1011_v52 = vadd.f32 %v1009_v51, %v1001_v50 }
0x150a   :  { %1680 = vtanh.f32 %v1011_v52 }
0x1514   :  { %v1681_v58 = vpop.eup %1680 }
0x1515   :  { %1014 = vrot.lane.b32.xlu0 %v1681_v58, %s1717_s23 }
0x1518   :  { %v1043_v60 = vpop.permute.xlu1 %1042 }
0x1519   :  { %v1080_v62 = vmul.f32 %v1043_v60, %v1024_v61  ;;  %1047 = vperm.xlu0 %1617, %v1033_v59  }
0x151b   :  { %1540 = vmatprep.mubr.msk.f32.mxu0 %vm185_vm2, %v1080_v62 }
0x151c   :  { %v1053_v2 = vpop.permute.xlu1 %1052 }
0x151d   :  { %1062 = vperm.xlu0 %1617, %v1036_v63   ;;  %v1082_v5 = vmul.f32 %v1053_v2, %v1026_v13 }
0x1520   :  { %v1058_v14 = vpop.permute.xlu1 %1057 }
0x1521   :  { %v1083_v11 = vmul.f32 %v1058_v14, %v1027_v7 }
0x1524   :  { %v1068_v4 = vpop.permute.xlu1 %1067 }
0x1525   :  { %v1085_v22 = vmul.f32 %v1068_v4, %v1029_v20 }
0x1528   :  { %v1073_v17 = vpop.permute.xlu1 %1072 }
0x1529   :  { %v1086_v24 = vmul.f32 %v1073_v17, %v1030_v23 }
0x1587   :  { %v1015_v0 = vpop.permute.xlu0 %1014 }
0x1588   :  { %v1017_v1 = vmul.f32 %v1679_v44, %v1015_v0 }
0x158a   :  { %1019 = vrot.lane.b32.xlu0 %v1017_v1, %s1718_s4 }
0x158e   :  { %1077 = vperm.xlu0 %1617, %v1039_v6  }
0x1598   :  { %v1048_v8 = vpop.permute.xlu0 %1047 }
0x1599   :  { %v1081_v15 = vmul.f32 %v1048_v8, %v1025_v3 }
0x159b   :  { %1541 = vmatmul.mubr.msk.f32.vlgmr.msra.gmra.mrb[10].mxu0 %vm185_vm2, %v1081_v15 }
0x159c   :  { %v1063_v10 = vpop.permute.xlu0 %1062  ;;  %1543 = vmatprep.mubr.msk.f32.mxu0 %vm185_vm2, %v1082_v5 }
0x159d   :  { %v1084_v12 = vmul.f32 %v1063_v10, %v1028_v9 }
0x159f   :  { %1544 = vmatmul.mubr.msk.f32.gmra.mrb[12].mxu0 %vm185_vm2, %v1083_v11 }
0x15a0   :  { %1546 = vmatprep.mubr.msk.f32.mxu0 %vm185_vm2, %v1084_v12 }
0x15a3   :  { %1547 = vmatmul.mubr.msk.f32.gmra.mrb[14].mxu0 %vm185_vm2, %v1085_v22 }
0x15a4   :  { %1549 = vmatprep.mubr.msk.f32.mxu0 %vm185_vm2, %v1086_v24 }
0x15fc   :  { %v1020_v25 = vpop.permute.xlu0 %1019 }
0x15fd   :  { %1023 = vst.msk [vmem:[#allocation3 + $0x38] sm:$0xff] %vm185_vm2, %v1020_v25 }
0x1604   :  { %v1031_v26 = vld [vmem:[#allocation3 + $0x38] sm:$0xff] }
0x160d   :  { %v1078_v27 = vpop.permute.xlu0 %1077 }
0x160e   :  { %v1087_v28 = vmul.f32 %v1078_v27, %v1031_v26 }
0x1610   :  { %1550 = vmatmul.mubr.msk.f32.gmra.mrb[16].mxu0 %vm185_vm2, %v1087_v28 }
0x166e   :  { %v1542_v30 = vpop.f32.mrb[10].mxu0 }
0x166f   :  { %v1195_v21 = vadd.f32 %v1542_v30, %v1360_v29  ;;  %v1189_v31 = vpop.f32.mrb[11].mxu0 }
0x1670   :  { %v1190_v32 = vadd.f32 %v1360_v29, %v1189_v31 }
0x1671   :  { %1230 = vmax.xlane.f32.xlu0 %v1195_v21 }
0x1672   :  { %v1545_v33 = vpop.f32.mrb[12].mxu0  ;;  %1228 = vmax.xlane.f32.xlu1 %v1190_v32 }
0x1673   :  { %v1205_v34 = vadd.f32 %v1545_v33, %v1360_v29  ;;  %v1199_v35 = vpop.f32.mrb[13].mxu0 }
0x1674   :  { %v1200_v36 = vadd.f32 %v1360_v29, %v1199_v35 }
0x1676   :  { %v1548_v37 = vpop.f32.mrb[14].mxu0  ;;  %1232 = vmax.xlane.f32.xlu0 %v1200_v36  ;;  %1234 = vmax.xlane.f32.xlu1 %v1205_v34 }
0x1677   :  { %v1215_v38 = vadd.f32 %v1548_v37, %v1360_v29  ;;  %v1209_v39 = vpop.f32.mrb[15].mxu0 }
0x1678   :  { %v1210_v40 = vadd.f32 %v1360_v29, %v1209_v39 }
0x167a   :  { %1236 = vmax.xlane.f32.xlu0 %v1210_v40  ;;  %1238 = vmax.xlane.f32.xlu1 %v1215_v38 }
0x16e3   :  { %v1551_v41 = vpop.f32.mrb[16].mxu0 }
0x16e4   :  { %v1225_v42 = vadd.f32 %v1551_v41, %v1360_v29  ;;  %v1219_v43 = vpop.f32.mrb[17].mxu0 }
0x16e5   :  { %v1220_v44 = vadd.f32 %v1360_v29, %v1219_v43 }
0x16e6   :  { %1242 = vmax.xlane.f32.xlu1 %v1225_v42 }
0x16e7   :  { %1240 = vmax.xlane.f32.xlu0 %v1220_v44 }
0x16fe   :  { %v1231_v45 = vpop.xlane.xlu0 %1230 }
0x16ff   :  { %v1245_v46 = vsub.f32 %v1195_v21, %v1231_v45  ;;  %v1229_v18 = vpop.xlane.xlu1 %1228 }
0x1700   :  { %v1244_v19 = vsub.f32 %v1190_v32, %v1229_v18 }
0x1701   :  { %v1254_v47 = vmul.f32 1.442695, %v1245_v46 }
0x1702   :  { %v1252_v48 = vmul.f32 1.442695, %v1244_v19 }
0x1703   :  { %1682 = vpow2.f32 %v1254_v47  ;;  %v1233_v49 = vpop.xlane.xlu0 %1232  ;;  %v1235_v50 = vpop.xlane.xlu1 %1234 }
0x1704   :  { %1684 = vpow2.f32 %v1252_v48  ;;  %v1246_v51 = vsub.f32 %v1200_v36, %v1233_v49  ;;  %v1247_v52 = vsub.f32 %v1205_v34, %v1235_v50 }
0x1706   :  { %v1256_v53 = vmul.f32 1.442695, %v1246_v51  ;;  %v1258_v54 = vmul.f32 1.442695, %v1247_v52 }
0x1707   :  { %v1237_v55 = vpop.xlane.xlu0 %1236  ;;  %v1239_v16 = vpop.xlane.xlu1 %1238 }
0x1708   :  { %1686 = vpow2.f32 %v1256_v53  ;;  %v1248_v56 = vsub.f32 %v1210_v40, %v1237_v55  ;;  %v1249_v57 = vsub.f32 %v1215_v38, %v1239_v16 }
0x1709   :  { %1688 = vpow2.f32 %v1258_v54 }
0x170a   :  { %v1260_v58 = vmul.f32 1.442695, %v1248_v56  ;;  %v1262_v59 = vmul.f32 1.442695, %v1249_v57 }
0x170c   :  { %1690 = vpow2.f32 %v1260_v58 }
0x170d   :  { %v1683_v60 = vpop.eup %1682  ;;  %1692 = vpow2.f32 %v1262_v59 }
0x170e   :  { %v1685_v61 = vpop.eup %1684  ;;  %1270 = vadd.xlane.f32.xlu1 %v1683_v60 }
0x170f   :  { %1268 = vadd.xlane.f32.xlu0 %v1685_v61 }
0x1712   :  { %v1687_v62 = vpop.eup %1686 }
0x1713   :  { %v1689_v63 = vpop.eup %1688  ;;  %1272 = vadd.xlane.f32.xlu0 %v1687_v62 }
0x1714   :  { %1274 = vadd.xlane.f32.xlu1 %v1689_v63 }
0x1716   :  { %v1691_v0 = vpop.eup %1690 }
0x1717   :  { %v1693_v1 = vpop.eup %1692  ;;  %1276 = vadd.xlane.f32.xlu0 %v1691_v0 }
0x1718   :  { %1278 = vadd.xlane.f32.xlu1 %v1693_v1 }
0x1773   :  { %v1243_v6 = vpop.xlane.xlu1 %1242 }
0x1774   :  { %v1251_v2 = vsub.f32 %v1225_v42, %v1243_v6  ;;  %v1241_v14 = vpop.xlane.xlu0 %1240 }
0x1775   :  { %v1250_v3 = vsub.f32 %v1220_v44, %v1241_v14 }
0x1776   :  { %v1266_v8 = vmul.f32 1.442695, %v1251_v2 }
0x1777   :  { %v1264_v13 = vmul.f32 1.442695, %v1250_v3 }
0x1778   :  { %1694 = vpow2.f32 %v1266_v8 }
0x1779   :  { %1696 = vpow2.f32 %v1264_v13 }
0x1782   :  { %v1979_v4 = vpop.eup %1694 }
0x1783   :  { %v1981_v15 = vpop.eup %1696  ;;  %1282 = vadd.xlane.f32.xlu1 %v1979_v4 }
0x1784   :  { %1280 = vadd.xlane.f32.xlu0 %v1981_v15 }
0x179b   :  { %v1271_v5 = vpop.xlane.xlu1 %1270 }
0x179c   :  { %1698 = vrcp.f32 %v1271_v5  ;;  %v1269_v7 = vpop.xlane.xlu0 %1268 }
0x179d   :  { %1700 = vrcp.f32 %v1269_v7 }
0x17a0   :  { %v1273_v9 = vpop.xlane.xlu0 %1272 }
0x17a1   :  { %1702 = vrcp.f32 %v1273_v9  ;;  %v1275_v10 = vpop.xlane.xlu1 %1274 }
0x17a2   :  { %1704 = vrcp.f32 %v1275_v10 }
0x17a4   :  { %v1277_v11 = vpop.xlane.xlu0 %1276 }
0x17a5   :  { %1706 = vrcp.f32 %v1277_v11  ;;  %v1279_v12 = vpop.xlane.xlu1 %1278 }
0x17a6   :  { %v1699_v17 = vpop.eup %1698  ;;  %1708 = vrcp.f32 %v1279_v12 }
0x17a7   :  { %v1701_v20 = vpop.eup %1700  ;;  %v1293_v22 = vmul.f32 %v1699_v17, %v1271_v5 }
0x17a8   :  { %v1292_v23 = vmul.f32 %v1701_v20, %v1269_v7 }
0x17a9   :  { %v1301_v24 = vsub.f32 2.0, %v1293_v22 }
0x17aa   :  { %v1300_v25 = vsub.f32 2.0, %v1292_v23 }
0x17ab   :  { %v1703_v26 = vpop.eup %1702  ;;  %v1309_v27 = vmul.f32 %v1699_v17, %v1301_v24 }
0x17ac   :  { %v1705_v28 = vpop.eup %1704  ;;  %v1308_v29 = vmul.f32 %v1701_v20, %v1300_v25  ;;  %v1294_v30 = vmul.f32 %v1703_v26, %v1273_v9 }
0x17ad   :  { %v1317_v21 = vmul.f32 %v1683_v60, %v1309_v27  ;;  %v1295_v31 = vmul.f32 %v1705_v28, %v1275_v10 }
0x17ae   :  { %v1316_v32 = vmul.f32 %v1685_v61, %v1308_v29  ;;  %v1302_v33 = vsub.f32 2.0, %v1294_v30 }
0x17af   :  { %v1707_v34 = vpop.eup %1706  ;;  %1325 = vst [vmem:[%s2018_s7 + $0x8] sm:$0xff] %v1317_v21  ;;  %v1303_v35 = vsub.f32 2.0, %v1295_v31 }
0x17b0   :  { %v1709_v36 = vpop.eup %1708  ;;  %1324 = vst [vmem:[%s2018_s7] sm:$0xff] %v1316_v32  ;;  %v1310_v37 = vmul.f32 %v1703_v26, %v1302_v33  ;;  %v1296_v38 = vmul.f32 %v1707_v34, %v1277_v11 }
0x17b1   :  { %v1311_v39 = vmul.f32 %v1705_v28, %v1303_v35  ;;  %v1297_v40 = vmul.f32 %v1709_v36, %v1279_v12 }
0x17b2   :  { %v1318_v41 = vmul.f32 %v1687_v62, %v1310_v37  ;;  %v1304_v42 = vsub.f32 2.0, %v1296_v38 }
0x17b3   :  { %v1319_v43 = vmul.f32 %v1689_v63, %v1311_v39  ;;  %v1305_v44 = vsub.f32 2.0, %v1297_v40 }
0x17b4   :  { %1326 = vst [vmem:[%s2018_s7 + $0x10] sm:$0xff] %v1318_v41  ;;  %v1312_v45 = vmul.f32 %v1707_v34, %v1304_v42 }
0x17b5   :  { %1327 = vst [vmem:[%s2018_s7 + $0x18] sm:$0xff] %v1319_v43  ;;  %v1313_v46 = vmul.f32 %v1709_v36, %v1305_v44 }
0x17b6   :  { %v1320_v18 = vmul.f32 %v1691_v0, %v1312_v45 }
0x17b7   :  { %v1321_v19 = vmul.f32 %v1693_v1, %v1313_v46 }
0x17b8   :  { %1328 = vst [vmem:[%s2018_s7 + $0x20] sm:$0xff] %v1320_v18 }
0x17b9   :  { %1329 = vst [vmem:[%s2018_s7 + $0x28] sm:$0xff] %v1321_v19 }
0x1810   :  { %v1283_v47 = vpop.xlane.xlu1 %1282 }
0x1811   :  { %1710 = vrcp.f32 %v1283_v47  ;;  %v1281_v48 = vpop.xlane.xlu0 %1280 }
0x1812   :  { %1712 = vrcp.f32 %v1281_v48 }
0x181b   :  { %v1711_v49 = vpop.eup %1710 }
0x181c   :  { %v1713_v50 = vpop.eup %1712  ;;  %v1299_v51 = vmul.f32 %v1711_v49, %v1283_v47 }
0x181d   :  { %v1298_v52 = vmul.f32 %v1713_v50, %v1281_v48 }
0x181e   :  { %v1307_v53 = vsub.f32 2.0, %v1299_v51 }
0x181f   :  { %v1306_v54 = vsub.f32 2.0, %v1298_v52 }
0x1820   :  { %v1315_v55 = vmul.f32 %v1711_v49, %v1307_v53 }
0x1821   :  { %v1314_v16 = vmul.f32 %v1713_v50, %v1306_v54 }
0x1822   :  { %v1323_v56 = vmul.f32 %v1979_v4, %v1315_v55 }
0x1823   :  { %v1322_v57 = vmul.f32 %v1981_v15, %v1314_v16 }
0x1824   :  { %1331 = vst [vmem:[%s2018_s7 + $0x38] sm:$0xff] %v1323_v56 }
0x1825   :  { %1330 = vst [vmem:[%s2018_s7 + $0x30] sm:$0xff] %v1322_v57 }

</bundles_post_ra>
